<compile_context>
chip_gen: v7x
topology: tpu7x:2x2x1
jax: 0.10.0
libtpu: 0.0.40
codegen_flags: <defaults>
</compile_context>

<pallas_src>
import functools

import numpy as np
import jax
import jax.numpy as jnp
from jax import lax
from jax.experimental import pallas as pl
from jax.experimental.pallas import tpu as pltpu


def _round_up(x, m):
    return (x + m - 1) // m * m


def _conv_matmul_kernel(x_ref, w_ref, b_ref, o_ref, acc_ref, *, ck_tile, n_ck):
    """One deep MXU step of the (C*K) reduction.

    Grid = (B, T_tiles, n_ck); last axis is the reduction axis.
      x_ref  : (ck_tile, tt)  activation slab (C*K contraction on sublanes)
      w_ref  : (Opad, CK)     FULL weight, VMEM-resident (constant index_map)
      b_ref  : (Opad, 1)      bias
      o_ref  : (Opad, tt)     output tile, already in NCW orientation
      acc_ref: (Opad, tt)     f32 accumulator scratch
    """
    ck = pl.program_id(2)

    @pl.when(ck == 0)
    def _init():
        # Initialize the accumulator with the broadcast bias (free VALU work).
        acc_ref[...] = jnp.zeros(acc_ref.shape, acc_ref.dtype) + b_ref[...]

    if n_ck == 1:
        w_blk = w_ref[...]
    else:
        start = pl.multiple_of(ck * ck_tile, ck_tile)
        w_blk = w_ref[:, pl.ds(start, ck_tile)]

    acc_ref[...] += jnp.dot(w_blk, x_ref[...],
                            preferred_element_type=jnp.float32)

    @pl.when(ck == n_ck - 1)
    def _fin():
        o_ref[...] = acc_ref[...].astype(o_ref.dtype)


def _pick_tiles(T, CK, Opad, x_itemsize, w_itemsize,
                budget_bytes=36 * 1024 * 1024):
    """Pick (time_tile, ck_tile) under a VMEM working-set budget."""
    # Contraction tile: keep the whole C*K per step when reasonable, else a
    # 128-aligned divisor so the dynamic weight slice stays lane-aligned.
    if CK % 128 == 0 and CK > 2048:
        ck_tile = CK
        for cand in (2048, 1024, 512, 256, 128):
            if CK % cand == 0:
                ck_tile = cand
                break
    else:
        # TODO(synk): very large, non-128-divisible C*K falls back to a single
        # (possibly big) contraction block; stream it if it ever overflows VMEM.
        ck_tile = CK

    t_cap = _round_up(T, 128)       # never pick a tile larger than padded T
    tt = 128
    for cand in (2048, 1024, 512, 256):
        if cand > t_cap:
            continue
        need = (2 * cand * ck_tile * x_itemsize    # double-buffered x block
                + 3 * Opad * cand * 4              # 2x out block + accumulator
                + 2 * Opad * CK * w_itemsize       # resident weight (x2: safe)
                + 4096)                            # bias + slack
        if need <= budget_bytes:
            tt = cand
            break
    return tt, ck_tile


def feature_integrator_forward(x, weight, bias, kernel_size=64, stride=64,
                               use_bf16=False):
    """x: (B, F, C, L); weight: (O, C, K); bias: (O,) -> (B, O, T) float32."""
    B, F, C, L = x.shape
    O, Cw, K = weight.shape
    assert Cw == C, "Conv1d in_channels must match `channels` axis of x"
    assert K == kernel_size

    total = F * L
    T = (total - kernel_size) // stride + 1
    assert T >= 1

    # Same row-major reinterpretation as torch's x.reshape(B, C, F*L): a view.
    x2 = jnp.reshape(x, (B, C, total))

    if stride == kernel_size:
        # Non-overlapping windows are contiguous: free view reshape.
        xw = jnp.reshape(x2[:, :, :T * kernel_size], (B, C, T, kernel_size))
    else:
        # TODO(synk): overlapping-stride fallback materializes T window copies
        # in XLA (correct but untuned).
        xw = jnp.stack(
            [lax.dynamic_slice_in_dim(x2, t * stride, kernel_size, axis=2)
             for t in range(T)], axis=2)                 # (B, C, T, K)

    CK = C * kernel_size
    # One relayout pass over the activations: (B, C, T, K) -> (B, C*K, T).
    xck = jnp.reshape(jnp.transpose(xw, (0, 1, 3, 2)), (B, CK, T))

    # Pad out_channels only to the f32 sublane granule (8), not 128.
    Opad = _round_up(O, 8)
    w2 = jnp.reshape(weight, (O, CK))                    # (O, C*K), c-major
    if Opad != O:
        w2 = jnp.pad(w2, ((0, Opad - O), (0, 0)))
        b2 = jnp.pad(bias, (0, Opad - O))
    else:
        b2 = bias
    b2 = jnp.reshape(b2, (Opad, 1)).astype(jnp.float32)

    if use_bf16:   # fast MXU path (v6e/v7x); accumulation stays f32.
        xck = xck.astype(jnp.bfloat16)
        w2 = w2.astype(jnp.bfloat16)

    tt, ck_tile = _pick_tiles(T, CK, Opad,
                              xck.dtype.itemsize, w2.dtype.itemsize)
    n_ck = CK // ck_tile

    # Pad T up to a multiple of the time tile -> lane-dense output stores and
    # a real (parallel) T grid axis; padded columns are sliced off below.
    Tpad = _round_up(T, tt)
    if Tpad != T:
        xck = jnp.pad(xck, ((0, 0), (0, 0), (0, Tpad - T)))

    grid = (B, Tpad // tt, n_ck)

    flops = 2 * B * Tpad * Opad * CK
    bytes_accessed = int(B * CK * Tpad * xck.dtype.itemsize
                         + Opad * CK * w2.dtype.itemsize
                         + B * Opad * Tpad * 4 + Opad * 4)

    kernel = functools.partial(_conv_matmul_kernel, ck_tile=ck_tile, n_ck=n_ck)

    out_p = pl.pallas_call(
        kernel,
        out_shape=jax.ShapeDtypeStruct((B, Opad, Tpad), jnp.float32),
        grid=grid,
        in_specs=[
            # activations (B, C*K, Tpad): batch squeezed, reduction blocked
            pl.BlockSpec((None, ck_tile, tt),
                         lambda b, ti, ck: (b, ck, ti)),
            # full weight (Opad, C*K): constant index -> VMEM-resident
            pl.BlockSpec((Opad, CK), lambda b, ti, ck: (0, 0)),
            # bias (Opad, 1): constant index -> VMEM-resident
            pl.BlockSpec((Opad, 1), lambda b, ti, ck: (0, 0)),
        ],
        # output written directly in NCW (B, Opad, Tpad); T is the lane axis
        out_specs=pl.BlockSpec((None, Opad, tt),
                               lambda b, ti, ck: (b, 0, ti)),
        scratch_shapes=[pltpu.VMEM((Opad, tt), jnp.float32)],
        compiler_params=pltpu.CompilerParams(
            dimension_semantics=("parallel", "parallel", "arbitrary"),
            vmem_limit_bytes=48 * 1024 * 1024),   # safe on v7x (64 MiB VMEM)
        cost_estimate=pl.CostEstimate(flops=flops,
                                      transcendentals=0,
                                      bytes_accessed=bytes_accessed),
    )(xck, w2, b2)

    # Drop the (at most 7) padded output channels and the padded time steps.
    return out_p[:, :O, :T]


def _reference_forward(x, weight, bias, kernel_size=64, stride=64):
    B, F, C, L = x.shape
    x2 = jnp.reshape(x, (B, C, F * L))
    out = lax.conv_general_dilated(
        x2, weight,
        window_strides=(stride,),
        padding="VALID",
        dimension_numbers=("NCH", "OIH", "NCH"),
    )
    return out + bias.reshape(1, -1, 1)


if __name__ == "__main__":
    # Small shapes consistent with the module (kernel_size = stride = 64):
    # feature_dim * length = 128 -> two conv windows.
    B, F, C, L = 2, 8, 4, 16
    in_channels = C
    out_channels = 8
    kernel_size = 64
    stride = 64

    key = jax.random.PRNGKey(0)
    kx, kw, kb = jax.random.split(key, 3)

    x = jax.random.normal(kx, (B, F, C, L), dtype=jnp.float32)

    # Deterministic synthetic Conv1d params (PyTorch-style uniform init scale).
    fan_in = in_channels * kernel_size
    bound = 1.0 / np.sqrt(fan_in)
    weight = jax.random.uniform(kw, (out_channels, in_channels, kernel_size),
                                minval=-bound, maxval=bound, dtype=jnp.float32)
    bias = jax.random.uniform(kb, (out_channels,),
                              minval=-bound, maxval=bound, dtype=jnp.float32)

    T = (F * L - kernel_size) // stride + 1

    # f32 path (exact numerics check).
    fwd = jax.jit(functools.partial(feature_integrator_forward,
                                    kernel_size=kernel_size, stride=stride))
    out = jax.block_until_ready(fwd(x, weight, bias))

    ref = jax.block_until_ready(
        _reference_forward(x, weight, bias, kernel_size, stride))

    assert out.shape == (B, out_channels, T)
    np.testing.assert_allclose(np.asarray(out), np.asarray(ref),
                               rtol=1e-4, atol=1e-5)

    # bf16-operand fast path (recommended production default on v6e/v7x);
    # accumulation stays f32, so only loose agreement is expected.
    fwd_bf16 = jax.jit(functools.partial(feature_integrator_forward,
                                         kernel_size=kernel_size,
                                         stride=stride, use_bf16=True))
    out_bf16 = jax.block_until_ready(fwd_bf16(x, weight, bias))
    np.testing.assert_allclose(np.asarray(out_bf16), np.asarray(ref),
                               rtol=1e-1, atol=1e-1)

    print("KERNEL_OK")
</pallas_src>

<mosaic_0001>
module attributes {stable_mosaic.version = 11 : i64} {
  func.func @_conv_matmul_kernel(%arg0: i32, %arg1: i32, %arg2: i32, %arg3: memref<1x256x128xf32, #tpu.memory_space<vmem>>, %arg4: memref<8x256xf32, #tpu.memory_space<vmem>>, %arg5: memref<8x1xf32, #tpu.memory_space<vmem>>, %arg6: memref<1x8x128xf32, #tpu.memory_space<vmem>>, %arg7: memref<8x128xf32, #tpu.memory_space<vmem>>) attributes {dimension_semantics = [#tpu.dimension_semantics<parallel>, #tpu.dimension_semantics<parallel>, #tpu.dimension_semantics<arbitrary>], iteration_bounds = array<i64: 2, 1, 1>, scalar_prefetch = 0 : i64, scratch_operands = 1 : i64, tpu.core_type = #tpu.core_type<tc>, window_params = [{transform_indices = @transform_0, window_bounds = array<i64: 1, 256, 128>}, {pipeline_mode = #tpu.pipeline_mode<synchronous>, transform_indices = @transform_1, window_bounds = array<i64: 8, 256>}, {pipeline_mode = #tpu.pipeline_mode<synchronous>, transform_indices = @transform_2, window_bounds = array<i64: 8, 1>}, {transform_indices = @transform_3, window_bounds = array<i64: 1, 8, 128>}]} {
    %c0_i32 = arith.constant 0 : i32
    %0 = arith.cmpi eq, %arg2, %c0_i32 : i32
    %1 = arith.extui %0 : i1 to i32
    %c0_i32_0 = arith.constant 0 : i32
    %2 = arith.cmpi ne, %1, %c0_i32_0 : i32
    scf.if %2 {
      %cst_11 = arith.constant 0.000000e+00 : f32
      %13 = vector.broadcast %cst_11 : f32 to vector<8x128xf32>
      %c0_12 = arith.constant 0 : index
      %c0_13 = arith.constant 0 : index
      %14 = vector.load %arg5[%c0_12, %c0_13] : memref<8x1xf32, #tpu.memory_space<vmem>>, vector<8x1xf32>
      %15 = vector.broadcast %14 : vector<8x1xf32> to vector<8x128xf32>
      %16 = arith.addf %13, %15 : vector<8x128xf32>
      %c0_14 = arith.constant 0 : index
      %c0_15 = arith.constant 0 : index
      %17 = vector.load %arg7[%c0_14, %c0_15] : memref<8x128xf32, #tpu.memory_space<vmem>>, vector<8x128xf32>
      tpu.vector_store %arg7[%c0_14, %c0_15], %16 {strides = array<i32>} : memref<8x128xf32, #tpu.memory_space<vmem>>, vector<8x128xf32>,
    } else {
    }
    %c0 = arith.constant 0 : index
    %c0_1 = arith.constant 0 : index
    %3 = vector.load %arg4[%c0, %c0_1] : memref<8x256xf32, #tpu.memory_space<vmem>>, vector<8x256xf32>
    %c0_2 = arith.constant 0 : index
    %c0_3 = arith.constant 0 : index
    %4 = vector.load %arg7[%c0_2, %c0_3] : memref<8x128xf32, #tpu.memory_space<vmem>>, vector<8x128xf32>
    %c0_4 = arith.constant 0 : index
    %c0_5 = arith.constant 0 : index
    %c0_6 = arith.constant 0 : index
    %5 = vector.load %arg3[%c0_4, %c0_5, %c0_6] : memref<1x256x128xf32, #tpu.memory_space<vmem>>, vector<1x256x128xf32>
    %6 = vector.shape_cast %5 : vector<1x256x128xf32> to vector<256x128xf32>
    %cst = arith.constant dense<0.000000e+00> : vector<8x128xf32>
    %7 = tpu.matmul %3, %6, %cst {dimension_numbers = #tpu.dot_dimension_numbers<[1], [0], [0], [1], [0, 0, 1, 1], [], []>} : vector<8x256xf32>, vector<256x128xf32>, vector<8x128xf32> -> vector<8x128xf32>
    %8 = arith.addf %4, %7 : vector<8x128xf32>
    %c0_7 = arith.constant 0 : index
    %c0_8 = arith.constant 0 : index
    %9 = vector.load %arg7[%c0_7, %c0_8] : memref<8x128xf32, #tpu.memory_space<vmem>>, vector<8x128xf32>
    tpu.vector_store %arg7[%c0_7, %c0_8], %8 {strides = array<i32>} : memref<8x128xf32, #tpu.memory_space<vmem>>, vector<8x128xf32>,
    %c0_i32_9 = arith.constant 0 : i32
    %10 = arith.cmpi eq, %arg2, %c0_i32_9 : i32
    %11 = arith.extui %10 : i1 to i32
    %c0_i32_10 = arith.constant 0 : i32
    %12 = arith.cmpi ne, %11, %c0_i32_10 : i32
    scf.if %12 {
      %c0_11 = arith.constant 0 : index
      %c0_12 = arith.constant 0 : index
      %13 = vector.load %arg7[%c0_11, %c0_12] : memref<8x128xf32, #tpu.memory_space<vmem>>, vector<8x128xf32>
      %c0_13 = arith.constant 0 : index
      %c0_14 = arith.constant 0 : index
      %c0_15 = arith.constant 0 : index
      %14 = vector.load %arg6[%c0_13, %c0_14, %c0_15] : memref<1x8x128xf32, #tpu.memory_space<vmem>>, vector<1x8x128xf32>
      %15 = vector.shape_cast %14 : vector<1x8x128xf32> to vector<8x128xf32>
      %16 = vector.shape_cast %13 : vector<8x128xf32> to vector<1x8x128xf32>
      tpu.vector_store %arg6[%c0_13, %c0_14, %c0_15], %16 {strides = array<i32>} : memref<1x8x128xf32, #tpu.memory_space<vmem>>, vector<1x8x128xf32>,
    } else {
    }
    return
  }
  func.func @transform_0(%arg0: i32, %arg1: i32, %arg2: i32) -> (i32, i32, i32) {
    %c0_i32 = arith.constant 0 : i32
    return %arg0, %arg2, %arg1 : i32, i32, i32
  }
  func.func @transform_1(%arg0: i32, %arg1: i32, %arg2: i32) -> (i32, i32) {
    %c0_i32 = arith.constant 0 : i32
    %c0_i32_0 = arith.constant 0 : i32
    %c0_i32_1 = arith.constant 0 : i32
    return %c0_i32, %c0_i32_0 : i32, i32
  }
  func.func @transform_2(%arg0: i32, %arg1: i32, %arg2: i32) -> (i32, i32) {
    %c0_i32 = arith.constant 0 : i32
    %c0_i32_0 = arith.constant 0 : i32
    %c0_i32_1 = arith.constant 0 : i32
    return %c0_i32, %c0_i32_0 : i32, i32
  }
  func.func @transform_3(%arg0: i32, %arg1: i32, %arg2: i32) -> (i32, i32, i32) {
    %c0_i32 = arith.constant 0 : i32
    %c0_i32_0 = arith.constant 0 : i32
    return %arg0, %c0_i32, %arg1 : i32, i32, i32
  }
}

</mosaic_0001>

<bundles_post_ra>
// kernel: feature_integrator_forward.1
= control target key start
LH: loop header
LB: loop body
LE: loop exit
PB: predicated region body
PF: predicated region fallthrough
CT: control target
= control target key end

     0   :  { %s579_s12 = smov 0   ;;  %s581_s13 = smov 0   ;;  %s659_s0 = inlined_call_operand.vmem [shape: f32[2,256,128], index: 0, kind: input, shape index: {}]   ;;  %s660_s1 = inlined_call_operand.vmem [shape: f32[8,256], index: 1, kind: input, shape index: {}]   ;;  %s661_s2 = inlined_call_operand.vmem [shape: f32[8,1], index: 2, kind: input, shape index: {}]   ;;  %s662_s3 = inlined_call_operand.vmem [shape: f32[2,8,128], index: 3, kind: output, shape index: {}]  }
   0x1   :  { %s583_s14 = smov 0  }
   0x2 LB: > { %s32_s15 = sadd.s32 1, %s552_s13  ;;  %p434_p0 = scmp.ge.s32.totalorder %s556_s14, 1  ;;  %s556_s14 = sphi %s583_s14, %s13_s14   ;;  %s552_s13 = sphi %s581_s13, %s664_s13   ;;  %s548_s12 = sphi %s579_s12, %s663_s12  }
   0x3   : > { %p34_p1 = scmp.ge.s32.totalorder %s32_s15, 2  ;;  %p170_p2 = scmp.lt.s32.totalorder %s556_s14, 3 }
   0x5   : > { %s666_s15 = smov (%p34_p1, %s32_s15), 0  ;;  %p171_p3 = pnand %p434_p0, %p170_p2 }
   0x6   : > { %p204_p4 = scmp.lt.s32.totalorder (!%p171_p3), %s548_s12, 1  ;;  %v236_v0 = vld [vmem:[%s660_s1 + $0x8] sm:$0xff] (!%p171_p3)  ;;  %v227_v1 = vld [vmem:[%s661_s2] sm:$0xff] (!%p171_p3)  ;;  %v558_v2 = vmov (!%p171_p3), 0  }
   0x7   : > { %174 = sbr.rel (%p171_p3) target bundleno = 270 (0x10e), region = 32  ;;  %334 = vmatprep.mubr.f32.mxu0 (!%p171_p3), %v236_v0  ;;  %533 = vset.pattern.permute.xlu0 (!%p171_p3), %v558_v2  ;;  %v235_v51 = vld [vmem:[%s660_s1] sm:$0xff] (!%p171_p3) }
   0x8   : > { %230 = vperm.xlu0 (!%p171_p3), %533, %v227_v1  }
   0xe   : > { %s668_s12 = smov (!%p204_p4, %s548_s12), 1 }
   0xf   : > { %s440_s20 = sshll.u32 %s668_s12, 8  ;;  %s437_s26 = sshll.u32 %s668_s12, 3 }
  0x10   : > { %s609_s23 = scalar_lea.vmem %s659_s0, %s440_s20  ;;  %s222_s29 = scalar_lea.vmem %s662_s3, %s437_s26 }
  0x11   : > { %v254_v3 = vld [vmem:[%s609_s23 + $0x80] sm:$0xff]  ;;  %v255_v4 = vld [vmem:[%s609_s23 + $0x88] sm:$0xff]  ;;  %v256_v8 = vld [vmem:[%s609_s23 + $0x90] sm:$0xff] }
  0x12   : > { %v238_v5 = vld [vmem:[%s609_s23] sm:$0xff]  ;;  %v476_v6 = vpack.c.bf16 %v255_v4, %v254_v3  ;;  %v239_v7 = vld [vmem:[%s609_s23 + $0x8] sm:$0xff]  ;;  %v257_v9 = vld [vmem:[%s609_s23 + $0x98] sm:$0xff] }
  0x13   : > { %v478_v10 = vpack.c.bf16 %v239_v7, %v238_v5  ;;  %v480_v11 = vpack.c.bf16 %v257_v9, %v256_v8  ;;  %v240_v12 = vld [vmem:[%s609_s23 + $0x10] sm:$0xff]  ;;  %v241_v13 = vld [vmem:[%s609_s23 + $0x18] sm:$0xff]  ;;  %v258_v14 = vld [vmem:[%s609_s23 + $0xa0] sm:$0xff] }
  0x14   : > { %477 = vmatprep.subr.bf16.mxu0 %v476_v6  ;;  %v259_v15 = vld [vmem:[%s609_s23 + $0xa8] sm:$0xff]  ;;  %v482_v16 = vpack.c.bf16 %v241_v13, %v240_v12  ;;  %v242_v18 = vld [vmem:[%s609_s23 + $0x20] sm:$0xff]  ;;  %v260_v20 = vld [vmem:[%s609_s23 + $0xb0] sm:$0xff] }
  0x15   : > { %479 = vmatpush3.bf16.msra.mxu0 %v478_v10  ;;  %v484_v17 = vpack.c.bf16 %v259_v15, %v258_v14  ;;  %v243_v19 = vld [vmem:[%s609_s23 + $0x28] sm:$0xff]  ;;  %v261_v21 = vld [vmem:[%s609_s23 + $0xb8] sm:$0xff]  ;;  %v244_v24 = vld [vmem:[%s609_s23 + $0x30] sm:$0xff] }
  0x16   : > { %481 = vmatprep.subr.bf16.mxu0 %v480_v11  ;;  %v486_v22 = vpack.c.bf16 %v243_v19, %v242_v18  ;;  %v488_v23 = vpack.c.bf16 %v261_v21, %v260_v20  ;;  %v245_v25 = vld [vmem:[%s609_s23 + $0x38] sm:$0xff]  ;;  %v262_v26 = vld [vmem:[%s609_s23 + $0xc0] sm:$0xff]  ;;  %v263_v27 = vld [vmem:[%s609_s23 + $0xc8] sm:$0xff] }
  0x17   : > { %v490_v28 = vpack.c.bf16 %v245_v25, %v244_v24  ;;  %v492_v29 = vpack.c.bf16 %v263_v27, %v262_v26  ;;  %v246_v30 = vld [vmem:[%s609_s23 + $0x40] sm:$0xff]  ;;  %v247_v31 = vld [vmem:[%s609_s23 + $0x48] sm:$0xff]  ;;  %v264_v32 = vld [vmem:[%s609_s23 + $0xd0] sm:$0xff] }
  0x18   : > { %v265_v33 = vld [vmem:[%s609_s23 + $0xd8] sm:$0xff]  ;;  %v494_v34 = vpack.c.bf16 %v247_v31, %v246_v30  ;;  %v248_v36 = vld [vmem:[%s609_s23 + $0x50] sm:$0xff]  ;;  %v266_v38 = vld [vmem:[%s609_s23 + $0xe0] sm:$0xff] }
  0x19   : > { %483 = vmatpush3.bf16.msra.mxu0 %v482_v16  ;;  %v496_v35 = vpack.c.bf16 %v265_v33, %v264_v32  ;;  %v249_v37 = vld [vmem:[%s609_s23 + $0x58] sm:$0xff]  ;;  %v267_v39 = vld [vmem:[%s609_s23 + $0xe8] sm:$0xff]  ;;  %v250_v42 = vld [vmem:[%s609_s23 + $0x60] sm:$0xff] }
  0x1a   : > { %485 = vmatprep.subr.bf16.mxu0 %v484_v17  ;;  %v498_v40 = vpack.c.bf16 %v249_v37, %v248_v36  ;;  %v500_v41 = vpack.c.bf16 %v267_v39, %v266_v38  ;;  %v251_v43 = vld [vmem:[%s609_s23 + $0x68] sm:$0xff]  ;;  %v268_v44 = vld [vmem:[%s609_s23 + $0xf0] sm:$0xff]  ;;  %v269_v45 = vld [vmem:[%s609_s23 + $0xf8] sm:$0xff] }
  0x1b   : > { %v502_v46 = vpack.c.bf16 %v251_v43, %v250_v42  ;;  %v504_v47 = vpack.c.bf16 %v269_v45, %v268_v44  ;;  %v252_v48 = vld [vmem:[%s609_s23 + $0x70] sm:$0xff]  ;;  %v253_v49 = vld [vmem:[%s609_s23 + $0x78] sm:$0xff] }
  0x1c   : > { %v506_v50 = vpack.c.bf16 %v253_v49, %v252_v48 }
  0x1d   : > { %487 = vmatpush3.bf16.msra.mxu0 %v486_v22 }
  0x1e   : > { %489 = vmatprep.subr.bf16.mxu0 %v488_v23 }
  0x21   : > { %491 = vmatpush3.bf16.msra.mxu0 %v490_v28 }
  0x22   : > { %493 = vmatprep.subr.bf16.mxu0 %v492_v29 }
  0x25   : > { %495 = vmatpush3.bf16.msra.mxu0 %v494_v34 }
  0x26   : > { %497 = vmatprep.subr.bf16.mxu0 %v496_v35 }
  0x29   : > { %499 = vmatpush3.bf16.msra.mxu0 %v498_v40 }
  0x2a   : > { %501 = vmatprep.subr.bf16.mxu0 %v500_v41 }
  0x2d   : > { %503 = vmatpush3.bf16.msra.mxu0 %v502_v46 }
  0x2e   : > { %505 = vmatprep.subr.bf16.mxu0 %v504_v47 }
  0x31   : > { %507 = vmatpush3.bf16.msra.mxu0 %v506_v50 }
  0x34   : > { %335 = vmatmul.mubr.f32.vlgmr.msra.gmra.mrb[0].mxu0 %v235_v51 }
  0x87   : > { %v231_v54 = vpop.permute.xlu0 %230 }
 0x107   : > { %v473_v52 = vpop.f32.mrb[0].mxu0 }
 0x108   : > { %v474_v53 = vpop.f32.mrb[1].mxu0 }
 0x109   : > { %v475_v55 = vadd.f32 %v474_v53, %v473_v52 }
 0x10b   : > { %v340_v56 = vadd.f32 %v475_v55, %v231_v54 }
 0x10d   : > { %346 = vst [vmem:[%s222_s29] sm:$0xff] %v340_v56 }
 0x10e PF: > { %s13_s14 = sadd.s32 1, %s556_s14   ;;  %s663_s12 = smov %s552_s13 }
 0x10f   : > { %p10_p5 = scmp.ge.s32.totalorder %s13_s14, 4   ;;  %s664_s13 = smov %s666_s15 }
 0x111   :  { %12 = sbr.rel (!%p10_p5) target bundleno = 2 (0x2), region = 70 }

</bundles_post_ra>
